<compile_context>
chip_gen: v5e
topology: v5e:2x2
jax: 0.10.0
libtpu: 0.0.40
codegen_flags: <defaults>
</compile_context>

<pallas_src>
import functools

import jax
import jax.numpy as jnp
from jax.experimental import pallas as pl
from jax.experimental.pallas import tpu as pltpu


# ----------------------------------------------------------------------------
# Model configuration
# ----------------------------------------------------------------------------

B = 2            # batch
L = 8            # strokes_seq length
LC = 4           # strokes_ctx length
SD = 8           # stroke param dim (x, y, w, h, theta, r, g, b)
IMG_C, IMG_H, IMG_W = 3, 16, 16
PATCH = 4
N_PATCH = (IMG_H // PATCH) * (IMG_W // PATCH)           # 16
PATCH_FEAT = 2 * IMG_C * PATCH * PATCH                  # img + canvas -> 96
PATCH_FEAT_PAD = 128                                    # lane-dense pad of 96
D_MODEL = 128
D_Z = 64
D_HID = 256
DEC_OUT_PAD = 128                                       # lane-dense pad of L*SD=64

# --- packed-weight slab row offsets (all multiples of 16 for bf16 packing) ---
# W128 slab (bf16, 128 lanes)
R_POOL = 0                                   # 16 rows (pool matrix, B x B*N_PATCH used)
R_PATCH = 16                                 # 128 rows (patch_w, input padded 96->128)
R_CTX = R_PATCH + PATCH_FEAT_PAD             # 144: 32 rows (ctx_w)
R_ENC2 = R_CTX + LC * SD                     # 176: 256 rows (enc_w2, mu||log_sigma head)
R_DEC2 = R_ENC2 + D_HID                      # 432: 256 rows (dec_w2, padded to 128 lanes)
W128_ROWS = R_DEC2 + D_HID                   # 688
# W256 slab (bf16, 256 lanes)
R_ENC1 = 0                                   # 192 rows ([strokes_seq ; context] -> hidden)
R_DEC1 = R_ENC1 + L * SD + D_MODEL           # 192: 320 rows ([z ; context ; vis] -> hidden)
W256_ROWS = R_DEC1 + D_Z + 2 * D_MODEL       # 512
# bias slab rows (f32, 256 lanes)
BIAS_PATCH, BIAS_CTX, BIAS_ENC1, BIAS_ENC2, BIAS_DEC1, BIAS_DEC2 = range(6)


# ----------------------------------------------------------------------------
# Fused Pallas kernel: whole forward pass in one pallas_call
# ----------------------------------------------------------------------------

def _vaegan_fused_kernel(
        # activations / noise
        patches_ref, sctx_ref, sseq_ref, noise_ref,
        # packed parameters
        w128_ref, w256_ref, bias_ref,
        # outputs
        fake_ref, muls_ref, ctx_out_ref):
    f32, bf16 = jnp.float32, jnp.bfloat16

    # ---- context encoder: patch-embed, MXU mean-pool, strokes_ctx projection
    emb = (jnp.dot(patches_ref[...], w128_ref[R_PATCH:R_PATCH + PATCH_FEAT_PAD, :],
                   preferred_element_type=f32)
           + bias_ref[BIAS_PATCH:BIAS_PATCH + 1, 0:D_MODEL])
    emb = jnp.maximum(emb, 0.0).astype(bf16)                       # (B*NP, 128)

    # mean-pool over the patch axis via a constant block-diagonal pool matrix
    pool = w128_ref[R_POOL:R_POOL + B, 0:B * N_PATCH]              # (B, B*NP) bf16
    vis = jnp.dot(pool, emb, preferred_element_type=f32)           # (B, 128) f32

    ctx_proj = (jnp.dot(sctx_ref[...], w128_ref[R_CTX:R_CTX + LC * SD, :],
                        preferred_element_type=f32)
                + bias_ref[BIAS_CTX:BIAS_CTX + 1, 0:D_MODEL])
    context = jnp.maximum(ctx_proj + vis, 0.0)                     # (B, 128) f32
    ctx_out_ref[...] = context

    context_bf = context.astype(bf16)
    vis_bf = vis.astype(bf16)

    # ---- VAE encoder (concat-free: W1 split by input chunk) ----------------
    h = (jnp.dot(sseq_ref[...], w256_ref[R_ENC1:R_ENC1 + L * SD, :],
                 preferred_element_type=f32)
         + jnp.dot(context_bf,
                   w256_ref[R_ENC1 + L * SD:R_ENC1 + L * SD + D_MODEL, :],
                   preferred_element_type=f32)
         + bias_ref[BIAS_ENC1:BIAS_ENC1 + 1, :])
    h = jnp.maximum(h, 0.0).astype(bf16)                           # (B, 256)

    # merged head: one matmul, one lane-dense (B, 128) "mu || log_sigma" store
    mu_ls = (jnp.dot(h, w128_ref[R_ENC2:R_ENC2 + D_HID, :],
                     preferred_element_type=f32)
             + bias_ref[BIAS_ENC2:BIAS_ENC2 + 1, 0:2 * D_Z])       # (B, 128)
    muls_ref[...] = mu_ls

    mu = mu_ls[:, 0:D_Z]
    log_sigma = mu_ls[:, D_Z:2 * D_Z]

    # ---- reparameterize; stack encoded-z and random-z along rows -----------
    # TODO(synk): z = mu + exp(log_sigma) * eps assumes the real Encoder emits
    # log-sigma (not log-variance); verify against the original submodule.
    eps = noise_ref[0:B, :]                                        # (B, 64) f32
    z_enc = mu + jnp.exp(log_sigma) * eps
    z_both = jnp.concatenate([z_enc, noise_ref[B:2 * B, :]], axis=0)   # (2B, 64)

    # ---- decoder: one matmul pass for both z branches ----------------------
    cv_in = jnp.concatenate([context_bf, vis_bf], axis=1)          # (B, 256) bf16
    cv_in2 = jnp.concatenate([cv_in, cv_in], axis=0)               # (2B, 256) bf16
    hd = (jnp.dot(z_both.astype(bf16), w256_ref[R_DEC1:R_DEC1 + D_Z, :],
                  preferred_element_type=f32)
          + jnp.dot(cv_in2,
                    w256_ref[R_DEC1 + D_Z:R_DEC1 + D_Z + 2 * D_MODEL, :],
                    preferred_element_type=f32)
          + bias_ref[BIAS_DEC1:BIAS_DEC1 + 1, :])
    hd = jnp.maximum(hd, 0.0).astype(bf16)                         # (2B, 256)

    out = (jnp.dot(hd, w128_ref[R_DEC2:R_DEC2 + D_HID, :],
                   preferred_element_type=f32)
           + bias_ref[BIAS_DEC2:BIAS_DEC2 + 1, 0:DEC_OUT_PAD])     # (2B, 128)
    fake_ref[...] = jax.nn.sigmoid(out)


def _fused_forward_call(patches, sctx, sseq, noise, p):
    args = (patches, sctx, sseq, noise, p["w128"], p["w256"], p["bias"])
    out_shapes = (
        jax.ShapeDtypeStruct((2 * B, DEC_OUT_PAD), jnp.float32),   # fake (both z)
        jax.ShapeDtypeStruct((B, 2 * D_Z), jnp.float32),           # mu || log_sigma
        jax.ShapeDtypeStruct((B, D_MODEL), jnp.float32),           # context
    )
    vmem = pl.BlockSpec(memory_space=pltpu.MemorySpace.VMEM)
    return pl.pallas_call(
        _vaegan_fused_kernel,
        out_shape=out_shapes,
        in_specs=[vmem] * len(args),
        out_specs=tuple(pl.BlockSpec(memory_space=pltpu.MemorySpace.VMEM)
                        for _ in out_shapes),
    )(*args)


# ----------------------------------------------------------------------------
# Deterministic parameter init (synthetic sub-networks), packed for the kernel
# ----------------------------------------------------------------------------

def init_params():
    def dense(key, fan_in, fan_out):
        kw, kb = jax.random.split(key)
        scale = 1.0 / jnp.sqrt(jnp.float32(fan_in))
        w = jax.random.uniform(kw, (fan_in, fan_out), jnp.float32, -scale, scale)
        b = jax.random.uniform(kb, (fan_out,), jnp.float32, -scale, scale)
        return w, b

    keys = jax.random.split(jax.random.PRNGKey(42), 6)
    patch_w, patch_b = dense(keys[0], PATCH_FEAT, D_MODEL)          # (96, 128)
    ctx_w, ctx_b = dense(keys[1], LC * SD, D_MODEL)                 # (32, 128)
    enc_w1, enc_b1 = dense(keys[2], L * SD + D_MODEL, D_HID)        # (192, 256)
    enc_w2, enc_b2 = dense(keys[3], D_HID, 2 * D_Z)                 # (256, 128)
    dec_w1, dec_b1 = dense(keys[4], D_Z + 2 * D_MODEL, D_HID)       # (320, 256)
    dec_w2, dec_b2 = dense(keys[5], D_HID, L * SD)                  # (256, 64)

    # constant mean-pool matrix: block-diagonal 1/N_PATCH, padded to (16, 128)
    pool = jnp.repeat(jnp.eye(B, dtype=jnp.float32), N_PATCH, axis=1) / N_PATCH
    pool = jnp.pad(pool, ((0, 16 - B), (0, D_MODEL - B * N_PATCH)))

    patch_w_pad = jnp.pad(patch_w, ((0, PATCH_FEAT_PAD - PATCH_FEAT), (0, 0)))
    dec_w2_pad = jnp.pad(dec_w2, ((0, 0), (0, DEC_OUT_PAD - L * SD)))

    # two bf16 weight slabs (MXU-native; f32 accumulation in-kernel)
    w128 = jnp.concatenate(
        [pool, patch_w_pad, ctx_w, enc_w2, dec_w2_pad], axis=0).astype(jnp.bfloat16)
    w256 = jnp.concatenate([enc_w1, dec_w1], axis=0).astype(jnp.bfloat16)
    assert w128.shape == (W128_ROWS, D_MODEL)
    assert w256.shape == (W256_ROWS, D_HID)

    # one f32 bias slab, rows padded to 256 lanes
    def pad_bias(b):
        return jnp.pad(b, (0, D_HID - b.shape[0]))[None, :]
    bias = jnp.concatenate([
        pad_bias(patch_b), pad_bias(ctx_b), pad_bias(enc_b1),
        pad_bias(enc_b2), pad_bias(dec_b1),
        pad_bias(jnp.pad(dec_b2, (0, DEC_OUT_PAD - L * SD))),
    ], axis=0)                                                      # (6, 256) f32

    return {"w128": w128, "w256": w256, "bias": bias}


# ----------------------------------------------------------------------------
# Forward pass (mirrors VAEGANModel.forward)
# ----------------------------------------------------------------------------

def _patchify_nchw(x):
    # x: (B, C, H, W)  ->  (B, N_PATCH, C*PATCH*PATCH); plain-JAX layout glue.
    b, c, h, w = x.shape
    x = x.reshape(b, c, h // PATCH, PATCH, w // PATCH, PATCH)
    x = x.transpose(0, 2, 4, 1, 3, 5)                      # B, hp, wp, C, P, P
    return x.reshape(b, (h // PATCH) * (w // PATCH), c * PATCH * PATCH)


def vaegan_forward(params, batch, key, sample_z=True, seq_length=None):
    if seq_length is None:
        _, seq_length, _ = batch["strokes_seq"].shape
    assert seq_length == L  # synthetic decoder was built for fixed L

    # layout glue only (patchify + flatten + bf16 pre-cast + lane padding);
    # all compute is inside the fused kernel
    patches = jnp.concatenate(
        [_patchify_nchw(batch["img"]), _patchify_nchw(batch["canvas"])], axis=-1
    ).reshape(B * N_PATCH, PATCH_FEAT)
    patches = jnp.pad(
        patches, ((0, 0), (0, PATCH_FEAT_PAD - PATCH_FEAT))).astype(jnp.bfloat16)
    sctx = batch["strokes_ctx"].reshape(B, LC * SD).astype(jnp.bfloat16)
    sseq = batch["strokes_seq"].reshape(B, L * SD).astype(jnp.bfloat16)

    # single RNG op: rows 0:B = eps (reparameterization), rows B:2B = random_z
    noise = jax.random.normal(key, (2 * B, D_Z), jnp.float32)

    # TODO(synk): when sample_z=False the kernel still computes the random-z
    # decoder branch (wasted work only, result is discarded below).
    fake_both, mu_ls, context = _fused_forward_call(patches, sctx, sseq, noise, params)

    mu = mu_ls[:, :D_Z]
    log_sigma = mu_ls[:, D_Z:]
    fake = fake_both[:, :L * SD].reshape(2, B, L, SD)       # drop lane padding
    fake_data_encoded = fake[0]
    fake_data_random = fake[1] if sample_z else None

    return dict(fake_data_encoded=fake_data_encoded,
                fake_data_random=fake_data_random,
                mu=mu, log_sigma=log_sigma, context=context)


# TODO(synk): renderer (Painter) and netD (Discriminator) are training-time-only
# components in the PyTorch module and are not part of forward(); not ported.

# ----------------------------------------------------------------------------
# Driver
# ----------------------------------------------------------------------------

if __name__ == "__main__":
    root = jax.random.PRNGKey(0)
    k_seq, k_ctx, k_img, k_canvas, k_fwd = jax.random.split(root, 5)

    batch = {
        "strokes_seq": jax.random.uniform(k_seq, (B, L, SD), jnp.float32),
        "strokes_ctx": jax.random.uniform(k_ctx, (B, LC, SD), jnp.float32),
        "img": jax.random.uniform(k_img, (B, IMG_C, IMG_H, IMG_W), jnp.float32),
        "canvas": jax.random.uniform(k_canvas, (B, IMG_C, IMG_H, IMG_W), jnp.float32),
    }
    params = init_params()

    out = jax.jit(functools.partial(vaegan_forward, sample_z=True))(params, batch, k_fwd)
    jax.block_until_ready(out)

    assert out["fake_data_encoded"].shape == (B, L, SD)
    assert out["fake_data_random"].shape == (B, L, SD)
    assert out["mu"].shape == (B, D_Z) and out["log_sigma"].shape == (B, D_Z)
    assert out["context"].shape == (B, D_MODEL)
    assert jnp.all(jnp.isfinite(out["fake_data_encoded"]))
    assert jnp.all(jnp.isfinite(out["fake_data_random"]))
    assert jnp.all(out["fake_data_encoded"] >= 0.0) and jnp.all(out["fake_data_encoded"] <= 1.0)

    print("KERNEL_OK")
</pallas_src>

<mosaic_0001>
module attributes {stable_mosaic.version = 11 : i64} {
  func.func @_vaegan_fused_kernel(%arg0: memref<32x128xbf16, #tpu.memory_space<vmem>>, %arg1: memref<2x32xbf16, #tpu.memory_space<vmem>>, %arg2: memref<2x64xbf16, #tpu.memory_space<vmem>>, %arg3: memref<4x64xf32, #tpu.memory_space<vmem>>, %arg4: memref<688x128xbf16, #tpu.memory_space<vmem>>, %arg5: memref<512x256xbf16, #tpu.memory_space<vmem>>, %arg6: memref<6x256xf32, #tpu.memory_space<vmem>>, %arg7: memref<4x128xf32, #tpu.memory_space<vmem>>, %arg8: memref<2x128xf32, #tpu.memory_space<vmem>>, %arg9: memref<2x128xf32, #tpu.memory_space<vmem>>) attributes {dimension_semantics = [], scalar_prefetch = 0 : i64, scratch_operands = 0 : i64, tpu.core_type = #tpu.core_type<tc>} {
    %c0 = arith.constant 0 : index
    %c0_0 = arith.constant 0 : index
    %0 = vector.load %arg0[%c0, %c0_0] : memref<32x128xbf16, #tpu.memory_space<vmem>>, vector<32x128xbf16>
    %c16 = arith.constant 16 : index
    %c0_1 = arith.constant 0 : index
    %1 = vector.load %arg4[%c16, %c0_1] : memref<688x128xbf16, #tpu.memory_space<vmem>>, vector<128x128xbf16>
    %cst = arith.constant dense<0.000000e+00> : vector<32x128xf32>
    %2 = tpu.matmul %0, %1, %cst {dimension_numbers = #tpu.dot_dimension_numbers<[1], [0], [0], [1], [0, 0, 1, 1], [], []>} : vector<32x128xbf16>, vector<128x128xbf16>, vector<32x128xf32> -> vector<32x128xf32>
    %c0_2 = arith.constant 0 : index
    %c0_3 = arith.constant 0 : index
    %3 = vector.load %arg6[%c0_2, %c0_3] : memref<6x256xf32, #tpu.memory_space<vmem>>, vector<1x128xf32>
    %4 = vector.broadcast %3 : vector<1x128xf32> to vector<32x128xf32>
    %5 = arith.addf %2, %4 : vector<32x128xf32>
    %cst_4 = arith.constant 0.000000e+00 : f32
    %6 = vector.broadcast %cst_4 : f32 to vector<32x128xf32>
    %7 = arith.maximumf %5, %6 : vector<32x128xf32>
    %8 = arith.truncf %7 : vector<32x128xf32> to vector<32x128xbf16>
    %c0_5 = arith.constant 0 : index
    %c0_6 = arith.constant 0 : index
    %9 = vector.load %arg4[%c0_5, %c0_6] : memref<688x128xbf16, #tpu.memory_space<vmem>>, vector<2x32xbf16>
    %cst_7 = arith.constant dense<0.000000e+00> : vector<2x128xf32>
    %10 = tpu.matmul %9, %8, %cst_7 {dimension_numbers = #tpu.dot_dimension_numbers<[1], [0], [0], [1], [0, 0, 1, 1], [], []>} : vector<2x32xbf16>, vector<32x128xbf16>, vector<2x128xf32> -> vector<2x128xf32>
    %c0_8 = arith.constant 0 : index
    %c0_9 = arith.constant 0 : index
    %11 = vector.load %arg1[%c0_8, %c0_9] : memref<2x32xbf16, #tpu.memory_space<vmem>>, vector<2x32xbf16>
    %c144 = arith.constant 144 : index
    %c0_10 = arith.constant 0 : index
    %12 = vector.load %arg4[%c144, %c0_10] : memref<688x128xbf16, #tpu.memory_space<vmem>>, vector<32x128xbf16>
    %cst_11 = arith.constant dense<0.000000e+00> : vector<2x128xf32>
    %13 = tpu.matmul %11, %12, %cst_11 {dimension_numbers = #tpu.dot_dimension_numbers<[1], [0], [0], [1], [0, 0, 1, 1], [], []>} : vector<2x32xbf16>, vector<32x128xbf16>, vector<2x128xf32> -> vector<2x128xf32>
    %c1 = arith.constant 1 : index
    %c0_12 = arith.constant 0 : index
    %14 = vector.load %arg6[%c1, %c0_12] : memref<6x256xf32, #tpu.memory_space<vmem>>, vector<1x128xf32>
    %15 = vector.broadcast %14 : vector<1x128xf32> to vector<2x128xf32>
    %16 = arith.addf %13, %15 : vector<2x128xf32>
    %17 = arith.addf %16, %10 : vector<2x128xf32>
    %cst_13 = arith.constant 0.000000e+00 : f32
    %18 = vector.broadcast %cst_13 : f32 to vector<2x128xf32>
    %19 = arith.maximumf %17, %18 : vector<2x128xf32>
    %c0_14 = arith.constant 0 : index
    %c0_15 = arith.constant 0 : index
    %20 = vector.load %arg9[%c0_14, %c0_15] : memref<2x128xf32, #tpu.memory_space<vmem>>, vector<2x128xf32>
    tpu.vector_store %arg9[%c0_14, %c0_15], %19 {strides = array<i32>} : memref<2x128xf32, #tpu.memory_space<vmem>>, vector<2x128xf32>,
    %21 = arith.truncf %19 : vector<2x128xf32> to vector<2x128xbf16>
    %22 = arith.truncf %10 : vector<2x128xf32> to vector<2x128xbf16>
    %c0_16 = arith.constant 0 : index
    %c0_17 = arith.constant 0 : index
    %23 = vector.load %arg2[%c0_16, %c0_17] : memref<2x64xbf16, #tpu.memory_space<vmem>>, vector<2x64xbf16>
    %c0_18 = arith.constant 0 : index
    %c0_19 = arith.constant 0 : index
    %24 = vector.load %arg5[%c0_18, %c0_19] : memref<512x256xbf16, #tpu.memory_space<vmem>>, vector<64x256xbf16>
    %cst_20 = arith.constant dense<0.000000e+00> : vector<2x256xf32>
    %25 = tpu.matmul %23, %24, %cst_20 {dimension_numbers = #tpu.dot_dimension_numbers<[1], [0], [0], [1], [0, 0, 1, 1], [], []>} : vector<2x64xbf16>, vector<64x256xbf16>, vector<2x256xf32> -> vector<2x256xf32>
    %c64 = arith.constant 64 : index
    %c0_21 = arith.constant 0 : index
    %26 = vector.load %arg5[%c64, %c0_21] : memref<512x256xbf16, #tpu.memory_space<vmem>>, vector<128x256xbf16>
    %cst_22 = arith.constant dense<0.000000e+00> : vector<2x256xf32>
    %27 = tpu.matmul %21, %26, %cst_22 {dimension_numbers = #tpu.dot_dimension_numbers<[1], [0], [0], [1], [0, 0, 1, 1], [], []>} : vector<2x128xbf16>, vector<128x256xbf16>, vector<2x256xf32> -> vector<2x256xf32>
    %28 = arith.addf %25, %27 : vector<2x256xf32>
    %c2 = arith.constant 2 : index
    %c0_23 = arith.constant 0 : index
    %29 = vector.load %arg6[%c2, %c0_23] : memref<6x256xf32, #tpu.memory_space<vmem>>, vector<1x256xf32>
    %30 = vector.broadcast %29 : vector<1x256xf32> to vector<2x256xf32>
    %31 = arith.addf %28, %30 : vector<2x256xf32>
    %cst_24 = arith.constant 0.000000e+00 : f32
    %32 = vector.broadcast %cst_24 : f32 to vector<2x256xf32>
    %33 = arith.maximumf %31, %32 : vector<2x256xf32>
    %34 = arith.truncf %33 : vector<2x256xf32> to vector<2x256xbf16>
    %c176 = arith.constant 176 : index
    %c0_25 = arith.constant 0 : index
    %35 = vector.load %arg4[%c176, %c0_25] : memref<688x128xbf16, #tpu.memory_space<vmem>>, vector<256x128xbf16>
    %cst_26 = arith.constant dense<0.000000e+00> : vector<2x128xf32>
    %36 = tpu.matmul %34, %35, %cst_26 {dimension_numbers = #tpu.dot_dimension_numbers<[1], [0], [0], [1], [0, 0, 1, 1], [], []>} : vector<2x256xbf16>, vector<256x128xbf16>, vector<2x128xf32> -> vector<2x128xf32>
    %c3 = arith.constant 3 : index
    %c0_27 = arith.constant 0 : index
    %37 = vector.load %arg6[%c3, %c0_27] : memref<6x256xf32, #tpu.memory_space<vmem>>, vector<1x128xf32>
    %38 = vector.broadcast %37 : vector<1x128xf32> to vector<2x128xf32>
    %39 = arith.addf %36, %38 : vector<2x128xf32>
    %c0_28 = arith.constant 0 : index
    %c0_29 = arith.constant 0 : index
    %40 = vector.load %arg8[%c0_28, %c0_29] : memref<2x128xf32, #tpu.memory_space<vmem>>, vector<2x128xf32>
    tpu.vector_store %arg8[%c0_28, %c0_29], %39 {strides = array<i32>} : memref<2x128xf32, #tpu.memory_space<vmem>>, vector<2x128xf32>,
    %41 = vector.extract_strided_slice %39 {offsets = [0, 0], sizes = [2, 64], strides = [1, 1]} : vector<2x128xf32> to vector<2x64xf32>
    %42 = vector.extract_strided_slice %39 {offsets = [0, 64], sizes = [2, 64], strides = [1, 1]} : vector<2x128xf32> to vector<2x64xf32>
    %c0_30 = arith.constant 0 : index
    %c0_31 = arith.constant 0 : index
    %43 = vector.load %arg3[%c0_30, %c0_31] : memref<4x64xf32, #tpu.memory_space<vmem>>, vector<2x64xf32>
    %44 = math.exp %42 : vector<2x64xf32>
    %45 = arith.mulf %44, %43 : vector<2x64xf32>
    %46 = arith.addf %41, %45 : vector<2x64xf32>
    %c2_32 = arith.constant 2 : index
    %c0_33 = arith.constant 0 : index
    %47 = vector.load %arg3[%c2_32, %c0_33] : memref<4x64xf32, #tpu.memory_space<vmem>>, vector<2x64xf32>
    %48 = tpu.concatenate %46, %47 in 0 : vector<2x64xf32>, vector<2x64xf32> -> vector<4x64xf32>
    %49 = tpu.concatenate %21, %22 in 1 : vector<2x128xbf16>, vector<2x128xbf16> -> vector<2x256xbf16>
    %50 = tpu.concatenate %49, %49 in 0 : vector<2x256xbf16>, vector<2x256xbf16> -> vector<4x256xbf16>
    %51 = arith.truncf %48 : vector<4x64xf32> to vector<4x64xbf16>
    %c192 = arith.constant 192 : index
    %c0_34 = arith.constant 0 : index
    %52 = vector.load %arg5[%c192, %c0_34] : memref<512x256xbf16, #tpu.memory_space<vmem>>, vector<64x256xbf16>
    %cst_35 = arith.constant dense<0.000000e+00> : vector<4x256xf32>
    %53 = tpu.matmul %51, %52, %cst_35 {dimension_numbers = #tpu.dot_dimension_numbers<[1], [0], [0], [1], [0, 0, 1, 1], [], []>} : vector<4x64xbf16>, vector<64x256xbf16>, vector<4x256xf32> -> vector<4x256xf32>
    %c256 = arith.constant 256 : index
    %c0_36 = arith.constant 0 : index
    %54 = vector.load %arg5[%c256, %c0_36] : memref<512x256xbf16, #tpu.memory_space<vmem>>, vector<256x256xbf16>
    %cst_37 = arith.constant dense<0.000000e+00> : vector<4x256xf32>
    %55 = tpu.matmul %50, %54, %cst_37 {dimension_numbers = #tpu.dot_dimension_numbers<[1], [0], [0], [1], [0, 0, 1, 1], [], []>} : vector<4x256xbf16>, vector<256x256xbf16>, vector<4x256xf32> -> vector<4x256xf32>
    %56 = arith.addf %53, %55 : vector<4x256xf32>
    %c4 = arith.constant 4 : index
    %c0_38 = arith.constant 0 : index
    %57 = vector.load %arg6[%c4, %c0_38] : memref<6x256xf32, #tpu.memory_space<vmem>>, vector<1x256xf32>
    %58 = vector.broadcast %57 : vector<1x256xf32> to vector<4x256xf32>
    %59 = arith.addf %56, %58 : vector<4x256xf32>
    %cst_39 = arith.constant 0.000000e+00 : f32
    %60 = vector.broadcast %cst_39 : f32 to vector<4x256xf32>
    %61 = arith.maximumf %59, %60 : vector<4x256xf32>
    %62 = arith.truncf %61 : vector<4x256xf32> to vector<4x256xbf16>
    %c432 = arith.constant 432 : index
    %c0_40 = arith.constant 0 : index
    %63 = vector.load %arg4[%c432, %c0_40] : memref<688x128xbf16, #tpu.memory_space<vmem>>, vector<256x128xbf16>
    %cst_41 = arith.constant dense<0.000000e+00> : vector<4x128xf32>
    %64 = tpu.matmul %62, %63, %cst_41 {dimension_numbers = #tpu.dot_dimension_numbers<[1], [0], [0], [1], [0, 0, 1, 1], [], []>} : vector<4x256xbf16>, vector<256x128xbf16>, vector<4x128xf32> -> vector<4x128xf32>
    %c5 = arith.constant 5 : index
    %c0_42 = arith.constant 0 : index
    %65 = vector.load %arg6[%c5, %c0_42] : memref<6x256xf32, #tpu.memory_space<vmem>>, vector<1x128xf32>
    %66 = vector.broadcast %65 : vector<1x128xf32> to vector<4x128xf32>
    %67 = arith.addf %64, %66 : vector<4x128xf32>
    %68 = arith.negf %67 : vector<4x128xf32>
    %69 = math.exp %68 : vector<4x128xf32>
    %cst_43 = arith.constant 1.000000e+00 : f32
    %70 = vector.broadcast %cst_43 : f32 to vector<4x128xf32>
    %71 = arith.addf %70, %69 : vector<4x128xf32>
    %72 = arith.divf %70, %71 : vector<4x128xf32>
    %c0_44 = arith.constant 0 : index
    %c0_45 = arith.constant 0 : index
    %73 = vector.load %arg7[%c0_44, %c0_45] : memref<4x128xf32, #tpu.memory_space<vmem>>, vector<4x128xf32>
    tpu.vector_store %arg7[%c0_44, %c0_45], %72 {strides = array<i32>} : memref<4x128xf32, #tpu.memory_space<vmem>>, vector<4x128xf32>,
    return
  }
}

</mosaic_0001>

<bundles_post_ra>
// kernel: squeeze.6
= control target key start
LH: loop header
LB: loop body
LE: loop exit
PB: predicated region body
PF: predicated region fallthrough
CT: control target
= control target key end

     0   :  { %s130_s0 = inlined_call_operand.vmem [shape: f32[2,64], index: 0, kind: input, shape index: {}]   ;;  %s131_s1 = inlined_call_operand.hbm [shape: f32[2,8,8], index: 1, kind: output, shape index: {}]  }
   0x1   :  { %v5_v0 = vld [vmem:[%s130_s0] sm:$0x3] }
   0x2   :  { %6 = vst [vmem:[#allocation2] sm:$0x3] %v5_v0 }
   0x3   :  { %2 = vsyncpa [#allocation1], 0  ;;  %s98_s0 = smov 120   ;;  %s99_s8 = smov 104   ;;  %vm8_vm0 = vcmask 64512  }
   0x4   :  { %s100_s9 = smov 88   ;;  %s101_s10 = smov 112  }
   0x5   :  { %s102_s11 = smov 96   ;;  %s103_s12 = smov 80  }
   0x6   :  { %s104_s13 = smov 72   ;;  %s105_s14 = smov [#allocation0]  }
   0x7   :  { %s55_s15 = sshll.u32 %s105_s14, 4  ;;  %s57_s1 = sshll.u32 %s131_s1, 4  ;;  %s56_s15 = int_to_ptr.vmem [resolvable:$true] %s55_s15  ;;  %s58_s1 = int_to_ptr.hbm [resolvable:$true] %s57_s1 }
   0x9   :  { %v10_v1 = vld [vmem:[#allocation2] sm:$0x3]  }
   0xa   :  { %v22_v2 = vld [vmem:[#allocation2] sm:$0x3]   ;;  %11 = vrot.lane.b32.xlu0 %v10_v1, %s98_s0 }
   0xb   :  { %23 = vrot.lane.b32.xlu1 %v22_v2, %s99_s8  ;;  %v34_v3 = vld [vmem:[#allocation2] sm:$0x3]  }
   0xc   :  { %35 = vrot.lane.b32.xlu2 %v34_v3, %s100_s9  ;;  %v16_v4 = vld [vmem:[#allocation2] sm:$0x3]  }
   0xd   :  { %v28_v5 = vld [vmem:[#allocation2] sm:$0x3]  }
   0xe   :  { %v40_v6 = vld [vmem:[#allocation2] sm:$0x3]  }
   0xf   :  { %v46_v7 = vld [vmem:[#allocation2] sm:$0x3]  }
  0x10   :  { %v7_v9 = vld [vmem:[#allocation2] sm:$0x3]  }
  0x11   :  { %9 = vst.msk [vmem:[#allocation0] ss:$8 sm:$0x3] %vm8_vm0, %v7_v9  }
  0x12   :  { %17 = vrot.lane.b32.xlu0 %v16_v4, %s101_s10 }
  0x13   :  { %29 = vrot.lane.b32.xlu1 %v28_v5, %s102_s11 }
  0x14   :  { %41 = vrot.lane.b32.xlu2 %v40_v6, %s103_s12 }
  0x1a   :  { %47 = vrot.lane.b32.xlu0 %v46_v7, %s104_s13 }
  0x66   :  { %v36_v8 = vpop.permute.xlu2 %35  }
  0x67   :  { %39 = vst.msk [vmem:[#allocation0 + $0x5] ss:$8 sm:$0x3] %vm8_vm0, %v36_v8  }
  0x6e   :  { %v42_v10 = vpop.permute.xlu2 %41  }
  0x6f   :  { %45 = vst.msk [vmem:[#allocation0 + $0x6] ss:$8 sm:$0x3] %vm8_vm0, %v42_v10  }
  0x7c   :  { %v12_v11 = vpop.permute.xlu0 %11  }
  0x7d   :  { %v24_v12 = vpop.permute.xlu1 %23   ;;  %15 = vst.msk [vmem:[#allocation0 + $0x1] ss:$8 sm:$0x3] %vm8_vm0, %v12_v11  }
  0x7e   :  { %27 = vst.msk [vmem:[#allocation0 + $0x3] ss:$8 sm:$0x3] %vm8_vm0, %v24_v12  }
  0x84   :  { %v18_v13 = vpop.permute.xlu0 %17  }
  0x85   :  { %v30_v14 = vpop.permute.xlu1 %29   ;;  %21 = vst.msk [vmem:[#allocation0 + $0x2] ss:$8 sm:$0x3] %vm8_vm0, %v18_v13  }
  0x86   :  { %33 = vst.msk [vmem:[#allocation0 + $0x4] ss:$8 sm:$0x3] %vm8_vm0, %v30_v14  }
  0x8c   :  { %v48_v15 = vpop.permute.xlu0 %47  }
  0x8d   :  { %51 = vst.msk [vmem:[#allocation0 + $0x7] ss:$8 sm:$0x3] %vm8_vm0, %v48_v15  }
  0x8e   :  { %60 = dma.vmem_to_hbm [thread:$0]  %s56_s15, 256, %s58_s1, [#allocation1]  }
  0x8f   :  { %96 = dma.done.wait [#allocation1], 256  }
  0x90   :  { %97 = vsyncadd [#allocation1], 4294967040 }
  0x91   :  { %63 = vsyncpa [#allocation1], 1 }

// kernel: vaegan_forward.1
= control target key start
LH: loop header
LB: loop body
LE: loop exit
PB: predicated region body
PF: predicated region fallthrough
CT: control target
= control target key end

     0   :  { %s2354_s0 = inlined_call_operand.vmem [shape: bf16[32,128], index: 0, kind: input, shape index: {}]   ;;  %s2355_s1 = inlined_call_operand.vmem [shape: bf16[2,32], index: 1, kind: input, shape index: {}]   ;;  %s2356_s2 = inlined_call_operand.vmem [shape: bf16[2,64], index: 2, kind: input, shape index: {}]   ;;  %s2357_s3 = inlined_call_operand.vmem [shape: f32[4,64], index: 3, kind: input, shape index: {}]   ;;  %s2358_s4 = inlined_call_operand.vmem [shape: bf16[688,128], index: 4, kind: input, shape index: {}]   ;;  %s2359_s5 = inlined_call_operand.vmem [shape: bf16[512,256], index: 5, kind: input, shape index: {}]   ;;  %s2360_s6 = inlined_call_operand.vmem [shape: f32[6,256], index: 6, kind: input, shape index: {}]   ;;  %s2361_s7 = inlined_call_operand.vmem [shape: f32[4,128], index: 7, kind: output, shape index: {0}]   ;;  %s2362_s8 = inlined_call_operand.vmem [shape: f32[2,128], index: 8, kind: output, shape index: {1}]   ;;  %s2363_s9 = inlined_call_operand.hbm [shape: f32[2,128], index: 9, kind: output, shape index: {2}]  }
   0x1   :  { %v1580_v0 = vld [vmem:[%s2358_s4 + $0x40] sm:$0xff]  ;;  %v1579_v1 = vld [vmem:[%s2358_s4 + $0x38] sm:$0xff] }
   0x2   :  { %112 = vmatpush.bf16.msra.mxu0 %v1580_v0 }
   0x3   :  { %15 = vsyncpa [#allocation3], 0  ;;  %v1578_v2 = vld [vmem:[%s2358_s4 + $0x30] sm:$0xff]  ;;  %v1577_v3 = vld [vmem:[%s2358_s4 + $0x28] sm:$0xff]  ;;  %vm138_vm0 = vcmask 261120   ;;  %vm365_vm1 = vcmask 523264  }
   0x4   :  { %v1576_v4 = vld [vmem:[%s2358_s4 + $0x20] sm:$0xff]  ;;  %v1575_v5 = vld [vmem:[%s2358_s4 + $0x18] sm:$0xff]  ;;  %v1574_v6 = vld [vmem:[%s2358_s4 + $0x10] sm:$0xff]  ;;  %vm587_vm2 = vcmask 1040384   ;;  %s1713_s18 = smov 64   ;;  %vm581_vm3 = vcmask 1041408  }
   0x5   :  { %v1573_v7 = vld [vmem:[%s2358_s4 + $0x8] sm:$0xff]  ;;  %v1571_v8 = vld [vmem:[%s2354_s0] sm:$0xff]  ;;  %v1582_v10 = vld [vmem:[%s2358_s4 + $0x50] sm:$0xff]  ;;  %s1117_s17 = sshll.u32 %s2363_s9, 4  ;;  %s1118_s17 = int_to_ptr.hbm [resolvable:$true] %s1117_s17 }
   0x6   :  { %113 = vmatpush.bf16.msra.mxu0 %v1579_v1  ;;  %v1572_v9 = vld [vmem:[%s2354_s0 + $0x8] sm:$0xff]  ;;  %182 = vmatpush.bf16.msra.mxu3 %v1582_v10  ;;  %v155_v12 = vld [vmem:[%s2355_s1] sm:$0x1]  ;;  %v1270_v14 = vld [vmem:[%s2359_s5 + $0x30] sm:$0xf] }
   0x7   :  { %v1581_v11 = vld [vmem:[%s2358_s4 + $0x48] sm:$0xff]  ;;  %v1590_v15 = vld [vmem:[%s2359_s5 + $0x34] sm:$0xf0]  ;;  %v1262_v16 = vld [vmem:[%s2359_s5 + $0x20] sm:$0xf] }
   0x8   :  { %v1271_v17 = vor.u32 %v1590_v15, %v1270_v14  ;;  %v1588_v18 = vld [vmem:[%s2359_s5 + $0x24] sm:$0xf0]  ;;  %v1254_v21 = vld [vmem:[%s2359_s5 + $0x10] sm:$0xf]  ;;  %v1586_v22 = vld [vmem:[%s2359_s5 + $0x14] sm:$0xf0] }
   0x9   :  { %v1263_v20 = vor.u32 %v1588_v18, %v1262_v16  ;;  %v1255_v23 = vor.u32 %v1586_v22, %v1254_v21  ;;  %v1246_v24 = vld [vmem:[%s2359_s5] sm:$0xf]  ;;  %v1584_v25 = vld [vmem:[%s2359_s5 + $0x4] sm:$0xf0]  ;;  %v1589_v26 = vld [vmem:[%s2359_s5 + $0x34] sm:$0xf] }
   0xa   :  { %114 = vmatpush.bf16.msra.mxu0 %v1578_v2  ;;  %183 = vmatpush.bf16.msra.mxu3 %v1581_v11  ;;  %v1272_v27 = vld [vmem:[%s2359_s5 + $0x38] sm:$0xf0]  ;;  %v1238_v29 = vld [vmem:[%s2359_s5 + $0xb0] sm:$0xf]  ;;  %v1247_v30 = vor.u32 %v1584_v25, %v1246_v24  ;;  %v1606_v31 = vld [vmem:[%s2359_s5 + $0xb4] sm:$0xf0] }
   0xb   :  { %373 = vmatpush.bf16.msra.mxu2 %v1271_v17  ;;  %v1275_v32 = vor.u32 %v1589_v26, %v1272_v27  ;;  %v1239_v33 = vor.u32 %v1606_v31, %v1238_v29  ;;  %v1587_v34 = vld [vmem:[%s2359_s5 + $0x24] sm:$0xf]  ;;  %v1264_v35 = vld [vmem:[%s2359_s5 + $0x28] sm:$0xf0]  ;;  %v1230_v36 = vld [vmem:[%s2359_s5 + $0xa0] sm:$0xf] }
   0xc   :  { %v1853_v37 = vld [vmem:[%s2356_s2] sm:$0x1]  ;;  %v1604_v38 = vld [vmem:[%s2359_s5 + $0xa4] sm:$0xf0]  ;;  %v1267_v40 = vor.u32 %v1587_v34, %v1264_v35  ;;  %v1585_v43 = vld [vmem:[%s2359_s5 + $0x14] sm:$0xf] }
   0xd   :  { %1179 = vmatmul.msk.bf16.vlgmr.msra.gmra.mxu3 %vm138_vm0, %v155_v12  ;;  %v51_v39 = vld [vmem:[%s2360_s6] ss:$0 sm:$0xff]  ;;  %v1231_v41 = vor.u32 %v1604_v38, %v1230_v36  ;;  %v1256_v44 = vld [vmem:[%s2359_s5 + $0x18] sm:$0xf0]  ;;  %v1222_v46 = vld [vmem:[%s2359_s5 + $0x90] sm:$0xf] }
   0xe   :  { %115 = vmatpush.bf16.msra.mxu0 %v1577_v3  ;;  %299 = vmatpush.bf16.msrb.mxu3 %v1239_v33  ;;  %v1602_v49 = vld [vmem:[%s2359_s5 + $0x94] sm:$0xf0]  ;;  %v1259_v50 = vor.u32 %v1585_v43, %v1256_v44  ;;  %v1605_v55 = vld [vmem:[%s2359_s5 + $0xb4] sm:$0xf]  ;;  %v1583_v56 = vld [vmem:[%s2359_s5 + $0x4] sm:$0xf] }
   0xf   :  { %374 = vmatpush.bf16.msra.mxu2 %v1263_v20  ;;  %v1223_v51 = vor.u32 %v1602_v49, %v1222_v46  ;;  %v1248_v57 = vld [vmem:[%s2359_s5 + $0x8] sm:$0xf0]  ;;  %v1465_v58 = vld [vmem:[%s2359_s5 + $0x1f0] sm:$0xf]  ;;  %v1662_v59 = vld [vmem:[%s2359_s5 + $0x1f4] sm:$0xf0] }
  0x10   :  { %v1214_v60 = vld [vmem:[%s2359_s5 + $0x80] sm:$0xf]  ;;  %v1240_v63 = vld [vmem:[%s2359_s5 + $0xb8] sm:$0xf0]  ;;  %v1600_v0 = vld [vmem:[%s2359_s5 + $0x84] sm:$0xf0]  ;;  %v1251_v1 = vor.u32 %v1583_v56, %v1248_v57 }
  0x11   :  { %v1215_v2 = vor.u32 %v1600_v0, %v1214_v60  ;;  %v1232_v10 = vld [vmem:[%s2359_s5 + $0xa8] sm:$0xf0]  ;;  %v137_v11 = vld [vmem:[%s2358_s4] sm:$0x1]  ;;  %v1449_v14 = vld [vmem:[%s2359_s5 + $0x1d0] sm:$0xf] }
  0x12   :  { %116 = vmatpush.bf16.msra.mxu0 %v1576_v4  ;;  %300 = vmatpush.bf16.msrb.mxu3 %v1231_v41  ;;  %v1466_v4 = vor.u32 %v1662_v59, %v1465_v58  ;;  %v1658_v15 = vld [vmem:[%s2359_s5 + $0x1d4] sm:$0xf0]  ;;  %v1601_v16 = vld [vmem:[%s2359_s5 + $0x94] sm:$0xf]  ;;  %v1224_v17 = vld [vmem:[%s2359_s5 + $0x98] sm:$0xf0] }
  0x13   :  { %375 = vmatpush.bf16.msra.mxu2 %v1255_v23  ;;  %v1450_v18 = vor.u32 %v1658_v15, %v1449_v14  ;;  %v1441_v20 = vld [vmem:[%s2359_s5 + $0x1c0] sm:$0xf]  ;;  %v1656_v21 = vld [vmem:[%s2359_s5 + $0x1c4] sm:$0xf0]  ;;  %v1599_v22 = vld [vmem:[%s2359_s5 + $0x84] sm:$0xf] }
  0x14   :  { %v1216_v23 = vld [vmem:[%s2359_s5 + $0x88] sm:$0xf0]  ;;  %v1442_v24 = vor.u32 %v1656_v21, %v1441_v20  ;;  %v1597_v26 = vld [vmem:[%s2359_s5 + $0x74] sm:$0xf]  ;;  %v1208_v27 = vld [vmem:[%s2359_s5 + $0x78] sm:$0xf0] }
  0x15   :  { %v1219_v25 = vor.u32 %v1599_v22, %v1216_v23  ;;  %v1595_v29 = vld [vmem:[%s2359_s5 + $0x64] sm:$0xf]  ;;  %v1192_v33 = vld [vmem:[%s2359_s5 + $0x58] sm:$0xf0]  ;;  %v1184_v36 = vld [vmem:[%s2359_s5 + $0x48] sm:$0xf0] }
  0x16   :  { %117 = vmatpush.bf16.msra.mxu0 %v1575_v5  ;;  %301 = vmatpush.bf16.msrb.mxu3 %v1223_v51  ;;  %v1243_v5 = vor.u32 %v1605_v55, %v1240_v63  ;;  %v1591_v35 = vld [vmem:[%s2359_s5 + $0x44] sm:$0xf]  ;;  %v1598_v41 = vld [vmem:[%s2359_s5 + $0x74] sm:$0xf0]  ;;  %v1401_v44 = vld [vmem:[%s2359_s5 + $0x170] sm:$0xf] }
  0x17   :  { %376 = vmatpush.bf16.msra.mxu2 %v1247_v30  ;;  %v1200_v30 = vld [vmem:[%s2359_s5 + $0x68] sm:$0xf0]  ;;  %v1187_v38 = vor.u32 %v1591_v35, %v1184_v36  ;;  %v1425_v46 = vld [vmem:[%s2359_s5 + $0x1a0] sm:$0xf]  ;;  %v1417_v56 = vld [vmem:[%s2359_s5 + $0x190] sm:$0xf] }
  0x18   :  { %v1203_v31 = vor.u32 %v1595_v29, %v1200_v30  ;;  %v1198_v49 = vld [vmem:[%s2359_s5 + $0x60] sm:$0xf]  ;;  %v1650_v57 = vld [vmem:[%s2359_s5 + $0x194] sm:$0xf0]  ;;  %v1190_v60 = vld [vmem:[%s2359_s5 + $0x50] sm:$0xf] }
  0x19   :  { %v1418_v58 = vor.u32 %v1650_v57, %v1417_v56  ;;  %v1361_v15 = vld [vmem:[%s2359_s5 + $0x120] sm:$0xf]  ;;  %v1632_v22 = vld [vmem:[%s2359_s5 + $0x104] sm:$0xf0] }
  0x1a   :  { %118 = vmatpush.bf16.msra.mxu0 %v1574_v6  ;;  %1276 = vmatmul.msk.bf16.vlgmr.msra.gmra.mxu2 %vm365_vm1, %v1853_v37  ;;  %v1457_v6 = vld [vmem:[%s2359_s5 + $0x1e0] sm:$0xf] }
  0x1b   :  { %386 = vmatpush.bf16.msrb.mxu2 %v1275_v32  ;;  %302 = vmatpush.bf16.msrb.mxu3 %v1215_v2  ;;  %v1593_v32 = vld [vmem:[%s2359_s5 + $0x54] sm:$0xf]  ;;  %v1345_v21 = vld [vmem:[%s2359_s5 + $0x100] sm:$0xf] }
  0x1c   :  { %v1195_v34 = vor.u32 %v1593_v32, %v1192_v33  ;;  %v1346_v23 = vor.u32 %v1632_v22, %v1345_v21  ;;  %v160_v29 = vld [vmem:[%s2360_s6 + $0x1] ss:$0 sm:$0xff]  ;;  %v1637_v22 = vld [vmem:[%s2359_s5 + $0x134] sm:$0xf] }
  0x1d   :  { %v1612_v32 = vld [vmem:[%s2358_s4 + $0x80] sm:$0xff] }
  0x1e   :  { %119 = vmatpush.bf16.msra.mxu0 %v1573_v7  ;;  %v1660_v7 = vld [vmem:[%s2359_s5 + $0x1e4] sm:$0xf0] }
  0x1f   :  { %387 = vmatpush.bf16.msrb.mxu2 %v1267_v40  ;;  %v1458_v12 = vor.u32 %v1660_v7, %v1457_v6  ;;  %v1206_v40 = vld [vmem:[%s2359_s5 + $0x70] sm:$0xf]  ;;  %v1182_v6 = vld [vmem:[%s2359_s5 + $0x40] sm:$0xf]  ;;  %v1592_v7 = vld [vmem:[%s2359_s5 + $0x44] sm:$0xf0] }
  0x20   :  { %v1207_v43 = vor.u32 %v1598_v41, %v1206_v40 }
  0x21   :  { %120 = vmatmul.bf16.vlgmr.msra.gmra.mxu0 %v1571_v8 }
  0x22   :  { %303 = vmatpush.bf16.msrb.mxu3 %v1207_v43  ;;  %v1618_v43 = vld [vmem:[%s2358_s4 + $0xb0] sm:$0xff] }
  0x23   :  { %388 = vmatpush.bf16.msrb.mxu2 %v1259_v50  ;;  %v1596_v50 = vld [vmem:[%s2359_s5 + $0x64] sm:$0xf0] }
  0x27   :  { %389 = vmatpush.bf16.msrb.mxu2 %v1251_v1  ;;  %v1642_v1 = vld [vmem:[%s2359_s5 + $0x154] sm:$0xf0] }
  0x2a   :  { %1277 = vmatmul.msk.bf16.vlgmr.msrb.gmra.mxu2 %vm365_vm1, %v1853_v37  ;;  %v1433_v37 = vld [vmem:[%s2359_s5 + $0x1b0] sm:$0xf] }
  0x2b   :  { %810 = vmatpush.bf16.msra.mxu2 %v1466_v4  ;;  %v1648_v4 = vld [vmem:[%s2359_s5 + $0x184] sm:$0xf0] }
  0x2f   :  { %811 = vmatpush.bf16.msra.mxu2 %v1458_v12  ;;  %v1369_v12 = vld [vmem:[%s2359_s5 + $0x130] sm:$0xf] }
  0x31   :  { %125 = vmatmul.bf16.gmra.mxu0 %v1572_v9  ;;  %v1603_v9 = vld [vmem:[%s2359_s5 + $0xa4] sm:$0xf] }
  0x33   :  { %812 = vmatpush.bf16.msra.mxu2 %v1450_v18  ;;  %v1353_v18 = vld [vmem:[%s2359_s5 + $0x110] sm:$0xf] }
  0x37   :  { %813 = vmatpush.bf16.msra.mxu2 %v1442_v24  ;;  %v1622_v24 = vld [vmem:[%s2358_s4 + $0xd0] sm:$0xff] }
  0x90   :  { %v185_v59 = vpop.f32.mrf.mxu3 }
  0x91   :  { %v186_v30 = vadd.f32 %v185_v59, %v160_v29  ;;  %v1459_v59 = vld [vmem:[%s2359_s5 + $0x1e8] sm:$0xf0]  ;;  %v1635_v29 = vld [vmem:[%s2359_s5 + $0x124] sm:$0xf] }
  0x98   :  { %v187_v63 = vpop.f32.mrf.mxu3 }
  0x99   :  { %v1403_v63 = vld [vmem:[%s2359_s5 + $0x178] sm:$0xf0] }
  0x9e   :  { %v121_v13 = vpop.f32.mrf.mxu0 }
  0x9f   :  { %v122_v52 = vadd.f32 %v121_v13, %v51_v39  ;;  %v1235_v13 = vor.u32 %v1603_v9, %v1232_v10  ;;  %v1183_v9 = vor.u32 %v1592_v7, %v1182_v6  ;;  %v1640_v10 = vld [vmem:[%s2359_s5 + $0x144] sm:$0xf0]  ;;  %v1655_v7 = vld [vmem:[%s2359_s5 + $0x1c4] sm:$0xf] }
  0xa1   :  { %v131_v3 = vmax.f32 %v122_v52, 0.0  ;;  %v1199_v52 = vor.u32 %v1596_v50, %v1198_v49  ;;  %v1616_v49 = vld [vmem:[%s2358_s4 + $0xa0] sm:$0xff] }
  0xa2   :  { %v1608_v50 = vld [vmem:[%s2358_s4 + $0x60] sm:$0xff] }
  0xa3   :  { %304 = vmatpush.bf16.msrb.mxu3 %v1199_v52  ;;  %v1467_v52 = vld [vmem:[%s2359_s5 + $0x1f8] sm:$0xf0] }
  0xa6   :  { %v123_v19 = vpop.f32.mrf.mxu0 }
  0xa7   :  { %v124_v47 = vadd.f32 %v123_v19, %v51_v39  ;;  %v1227_v19 = vor.u32 %v1601_v16, %v1224_v17  ;;  %v1636_v16 = vld [vmem:[%s2359_s5 + $0x124] sm:$0xf0] }
  0xa8   :  { %v1362_v17 = vor.u32 %v1636_v16, %v1361_v15  ;;  %v1639_v16 = vld [vmem:[%s2359_s5 + $0x144] sm:$0xf] }
  0xa9   :  { %v132_v61 = vmax.f32 %v124_v47, 0.0 }
  0xab   :  { %v135_v8 = vpack.c.bf16 %v132_v61, %v131_v3  ;;  %v1594_v61 = vld [vmem:[%s2359_s5 + $0x54] sm:$0xf0]  ;;  %v1409_v3 = vld [vmem:[%s2359_s5 + $0x180] sm:$0xf] }
  0xac   :  { %v1191_v0 = vor.u32 %v1594_v61, %v1190_v60 }
  0xae   :  { %v126_v28 = vpop.f32.mrf.mxu0  ;;  %305 = vmatpush.bf16.msrb.mxu3 %v1191_v0 }
  0xaf   :  { %v127_v42 = vadd.f32 %v126_v28, %v51_v39  ;;  %v1211_v28 = vor.u32 %v1597_v26, %v1208_v27  ;;  %v2067_v26 = vpop.f32.mrf.mxu2  ;;  %v1621_v27 = vld [vmem:[%s2358_s4 + $0xc8] sm:$0xff] }
  0xb1   :  { %v133_v53 = vmax.f32 %v127_v42, 0.0 }
  0xb2   :  { %306 = vmatpush.bf16.msrb.mxu3 %v1183_v9 }
  0xb6   :  { %v128_v45 = vpop.f32.mrf.mxu0  ;;  %550 = vmatpush.bf16.msra.mxu3 %v1622_v24 }
  0xb7   :  { %v129_v48 = vadd.f32 %v128_v45, %v51_v39  ;;  %v1654_v39 = vld [vmem:[%s2359_s5 + $0x1b4] sm:$0xf0] }
  0xb8   :  { %v1434_v42 = vor.u32 %v1654_v39, %v1433_v37  ;;  %v1646_v45 = vld [vmem:[%s2359_s5 + $0x174] sm:$0xf0] }
  0xb9   :  { %v134_v54 = vmax.f32 %v129_v48, 0.0  ;;  %v1402_v47 = vor.u32 %v1646_v45, %v1401_v44  ;;  %v1652_v48 = vld [vmem:[%s2359_s5 + $0x1a4] sm:$0xf0]  ;;  %v1619_v37 = vld [vmem:[%s2358_s4 + $0xb8] sm:$0xff]  ;;  %v1610_v44 = vld [vmem:[%s2358_s4 + $0x70] sm:$0xff] }
  0xba   :  { %814 = vmatpush.bf16.msra.mxu2 %v1434_v42  ;;  %v1426_v51 = vor.u32 %v1652_v48, %v1425_v46  ;;  %551 = vmatpush.bf16.msra.mxu3 %v1621_v27  ;;  %v1609_v48 = vld [vmem:[%s2358_s4 + $0x68] sm:$0xff]  ;;  %v1419_v27 = vld [vmem:[%s2359_s5 + $0x198] sm:$0xf0] }
  0xbb   :  { %v136_v62 = vpack.c.bf16 %v134_v54, %v133_v53  ;;  %v1393_v53 = vld [vmem:[%s2359_s5 + $0x160] sm:$0xf]  ;;  %v1644_v54 = vld [vmem:[%s2359_s5 + $0x164] sm:$0xf0] }
  0xbc   :  { %v1394_v55 = vor.u32 %v1644_v54, %v1393_v53  ;;  %v1615_v54 = vld [vmem:[%s2358_s4 + $0x98] sm:$0xff] }
  0xbd   :  { %148 = vmatpush.bf16.msra.mxu1 %v136_v62  ;;  %v1385_v62 = vld [vmem:[%s2359_s5 + $0x150] sm:$0xf] }
  0xbe   :  { %815 = vmatpush.bf16.msra.mxu2 %v1426_v51  ;;  %v1386_v2 = vor.u32 %v1642_v1, %v1385_v62  ;;  %v1661_v51 = vld [vmem:[%s2359_s5 + $0x1f4] sm:$0xf] }
  0xbf   :  { %v1470_v57 = vor.u32 %v1661_v51, %v1467_v52  ;;  %v1645_v62 = vld [vmem:[%s2359_s5 + $0x174] sm:$0xf] }
  0xc0   :  { %v1406_v0 = vor.u32 %v1645_v62, %v1403_v63  ;;  %v1657_v1 = vld [vmem:[%s2359_s5 + $0x1d4] sm:$0xf] }
  0xc1   :  { %149 = vmatpush.bf16.msra.mxu1 %v135_v8  ;;  %v1377_v8 = vld [vmem:[%s2359_s5 + $0x140] sm:$0xf] }
  0xc2   :  { %816 = vmatpush.bf16.msra.mxu2 %v1418_v58  ;;  %v1659_v58 = vld [vmem:[%s2359_s5 + $0x1e4] sm:$0xf] }
  0xc3   :  { %v1462_v61 = vor.u32 %v1659_v58, %v1459_v59 }
  0xc4   :  { %1170 = vmatmul.msk.bf16.vlgmr.msra.gmra.mxu1 %vm138_vm0, %v137_v11  ;;  %v1378_v11 = vor.u32 %v1640_v10, %v1377_v8  ;;  %v1443_v8 = vld [vmem:[%s2359_s5 + $0x1c8] sm:$0xf0]  ;;  %v1641_v10 = vld [vmem:[%s2359_s5 + $0x154] sm:$0xf] }
  0xc5   :  { %312 = vmatpush.bf16.msrb.mxu1 %v1243_v5  ;;  %v1410_v5 = vor.u32 %v1648_v4, %v1409_v3  ;;  %v1643_v4 = vld [vmem:[%s2359_s5 + $0x164] sm:$0xf]  ;;  %v1446_v9 = vor.u32 %v1655_v7, %v1443_v8 }
  0xc7   :  { %817 = vmatpush.bf16.msra.mxu2 %v1410_v5  ;;  %v1395_v5 = vld [vmem:[%s2359_s5 + $0x168] sm:$0xf0] }
  0xc8   :  { %v1398_v6 = vor.u32 %v1643_v4, %v1395_v5  ;;  %v1489_v5 = vld [vmem:[%s2359_s5 + $0xe0] sm:$0xf] }
  0xc9   :  { %313 = vmatpush.bf16.msrb.mxu1 %v1235_v13  ;;  %v1638_v13 = vld [vmem:[%s2359_s5 + $0x134] sm:$0xf0] }
  0xca   :  { %v1370_v14 = vor.u32 %v1638_v13, %v1369_v12  ;;  %v1653_v13 = vld [vmem:[%s2359_s5 + $0x1b4] sm:$0xf] }
  0xcd   :  { %314 = vmatpush.bf16.msrb.mxu1 %v1227_v19  ;;  %v1634_v19 = vld [vmem:[%s2359_s5 + $0x114] sm:$0xf0] }
  0xce   :  { %v1354_v20 = vor.u32 %v1634_v19, %v1353_v18  ;;  %v1651_v19 = vld [vmem:[%s2359_s5 + $0x1a4] sm:$0xf] }
  0xd1   :  { %315 = vmatpush.bf16.msrb.mxu1 %v1219_v25  ;;  %v1614_v25 = vld [vmem:[%s2358_s4 + $0x90] sm:$0xff] }
  0xd2   :  { %537 = vmatpush.bf16.msrb.mxu0 %v1614_v25  ;;  %v1649_v25 = vld [vmem:[%s2359_s5 + $0x194] sm:$0xf] }
  0xd5   :  { %316 = vmatpush.bf16.msrb.mxu1 %v1211_v28  ;;  %v1613_v28 = vld [vmem:[%s2358_s4 + $0x88] sm:$0xff] }
  0xd6   :  { %538 = vmatpush.bf16.msrb.mxu0 %v1613_v28  ;;  %v1422_v28 = vor.u32 %v1649_v25, %v1419_v27 }
  0xd9   :  { %317 = vmatpush.bf16.msrb.mxu1 %v1203_v31  ;;  %v1620_v31 = vld [vmem:[%s2358_s4 + $0xc0] sm:$0xff] }
  0xda   :  { %552 = vmatpush.bf16.msra.mxu3 %v1620_v31  ;;  %539 = vmatpush.bf16.msrb.mxu0 %v1612_v32  ;;  %v1647_v31 = vld [vmem:[%s2359_s5 + $0x184] sm:$0xf] }
  0xdd   :  { %318 = vmatpush.bf16.msrb.mxu1 %v1195_v34  ;;  %v380_v34 = vpop.f32.mrf.mxu2 }
  0xde   :  { %553 = vmatpush.bf16.msra.mxu3 %v1619_v37 }
  0xe1   :  { %319 = vmatpush.bf16.msrb.mxu1 %v1187_v38  ;;  %v1611_v38 = vld [vmem:[%s2358_s4 + $0x78] sm:$0xff] }
  0xe2   :  { %540 = vmatpush.bf16.msrb.mxu0 %v1611_v38  ;;  %554 = vmatpush.bf16.msra.mxu3 %v1618_v43  ;;  %v1631_v38 = vld [vmem:[%s2359_s5 + $0x104] sm:$0xf] }
  0xe5   :  { %797 = vmatpush.bf16.msra.mxu1 %v1402_v47  ;;  %v2100_v46 = vpop.f32.mrf.mxu2  ;;  %v1617_v47 = vld [vmem:[%s2358_s4 + $0xa8] sm:$0xff] }
  0xe6   :  { %541 = vmatpush.bf16.msrb.mxu0 %v1610_v44  ;;  %555 = vmatpush.bf16.msra.mxu3 %v1617_v47  ;;  %v564_v44 = vld [vmem:[%s2357_s3] sm:$0x3] }
  0xe7   :  { %568 = vrot.lane.b32.xlu0 %v564_v44, %s1713_s18  ;;  %v1676_v44 = vld [vmem:[%s2358_s4 + $0x140] sm:$0xff] }
  0xe9   :  { %798 = vmatpush.bf16.msra.mxu1 %v1394_v55  ;;  %v1607_v55 = vld [vmem:[%s2358_s4 + $0x58] sm:$0xff] }
  0xea   :  { %542 = vmatpush.bf16.msrb.mxu0 %v1609_v48  ;;  %556 = vmatpush.bf16.msra.mxu3 %v1616_v49 }
  0xed   :  { %799 = vmatpush.bf16.msra.mxu1 %v1386_v2  ;;  %v393_v53 = vpop.f32.mrf.mxu2  ;;  %v1451_v2 = vld [vmem:[%s2359_s5 + $0x1d8] sm:$0xf0] }
  0xee   :  { %543 = vmatpush.bf16.msrb.mxu0 %v1608_v50  ;;  %557 = vmatpush.bf16.msra.mxu3 %v1615_v54  ;;  %v1454_v3 = vor.u32 %v1657_v1, %v1451_v2  ;;  %v1497_v1 = vld [vmem:[%s2359_s5 + $0xf0] sm:$0xf] }
  0xf1   :  { %800 = vmatpush.bf16.msra.mxu1 %v1378_v11  ;;  %v1387_v11 = vld [vmem:[%s2359_s5 + $0x158] sm:$0xf0] }
  0xf2   :  { %544 = vmatpush.bf16.msrb.mxu0 %v1607_v55  ;;  %v1390_v12 = vor.u32 %v1641_v10, %v1387_v11  ;;  %v1483_v10 = vld [vmem:[%s2359_s5 + $0xd8] sm:$0xf0]  ;;  %v1481_v11 = vld [vmem:[%s2359_s5 + $0xd0] sm:$0xf] }
  0xf5   :  { %801 = vmatpush.bf16.msra.mxu1 %v1370_v14  ;;  %v1435_v14 = vld [vmem:[%s2359_s5 + $0x1b8] sm:$0xf0] }
  0xf6   :  { %823 = vmatpush.bf16.msra.mxu0 %v1406_v0  ;;  %v1438_v15 = vor.u32 %v1653_v13, %v1435_v14  ;;  %v1499_v0 = vld [vmem:[%s2359_s5 + $0xf8] sm:$0xf0]  ;;  %v440_v13 = vld [vmem:[%s2360_s6 + $0x3] ss:$0 sm:$0xff] }
  0xf9   :  { %802 = vmatpush.bf16.msra.mxu1 %v1362_v17  ;;  %v1379_v17 = vld [vmem:[%s2359_s5 + $0x148] sm:$0xf0] }
  0xfa   :  { %824 = vmatpush.bf16.msra.mxu0 %v1398_v6  ;;  %v1382_v18 = vor.u32 %v1639_v16, %v1379_v17  ;;  %v1628_v6 = vld [vmem:[%s2359_s5 + $0xe4] sm:$0xf0] }
  0xfb   :  { %v1490_v8 = vor.u32 %v1628_v6, %v1489_v5 }
  0xfd   :  { %803 = vmatpush.bf16.msra.mxu1 %v1354_v20  ;;  %v1427_v20 = vld [vmem:[%s2359_s5 + $0x1a8] sm:$0xf0] }
  0xfe   :  { %825 = vmatpush.bf16.msra.mxu0 %v1390_v12  ;;  %v1430_v21 = vor.u32 %v1651_v19, %v1427_v20  ;;  %v1626_v12 = vld [vmem:[%s2359_s5 + $0xd4] sm:$0xf0] }
  0xff   :  { %v1482_v17 = vor.u32 %v1626_v12, %v1481_v11  ;;  %v963_v11 = vld [vmem:[%s2360_s6 + $0x5] ss:$0 sm:$0xff] }
 0x101   :  { %804 = vmatpush.bf16.msra.mxu1 %v1346_v23  ;;  %v1371_v23 = vld [vmem:[%s2359_s5 + $0x138] sm:$0xf0] }
 0x102   :  { %826 = vmatpush.bf16.msra.mxu0 %v1382_v18  ;;  %v1374_v24 = vor.u32 %v1637_v22, %v1371_v23 }
 0x106   :  { %827 = vmatpush.bf16.msra.mxu0 %v1374_v24 }
 0x141   :  { %v151_v33 = vpop.f32.mrf.mxu1 }
 0x142   :  { %v189_v35 = vadd.f32 %v186_v30, %v151_v33  ;;  %v193_v36 = vpack.c.bf16 %v151_v33, %v151_v33  ;;  %v1363_v30 = vld [vmem:[%s2359_s5 + $0x128] sm:$0xf0] }
 0x143   :  { %v1366_v32 = vor.u32 %v1635_v29, %v1363_v30  ;;  %v1411_v33 = vld [vmem:[%s2359_s5 + $0x188] sm:$0xf0] }
 0x144   :  { %v190_v39 = vmax.f32 %v189_v35, 0.0  ;;  %v586_v40 = vrot.slane %v193_v36, 7  ;;  %v1414_v34 = vor.u32 %v1647_v31, %v1411_v33  ;;  %v1633_v35 = vld [vmem:[%s2359_s5 + $0x114] sm:$0xf]  ;;  %v1475_v33 = vld [vmem:[%s2359_s5 + $0xc8] sm:$0xf0] }
 0x145   :  { %828 = vmatpush.bf16.msra.mxu0 %v1366_v32  ;;  %v1623_v32 = vld [vmem:[%s2359_s5 + $0xc4] sm:$0xf] }
 0x146   :  { %v192_v41 = vpack.c.bf16 %v190_v39, %v190_v39  ;;  %191 = vst [vmem:[#allocation2] sm:$0x3] %v190_v39  ;;  %v2091_v42 = vsel %vm587_vm2, %v193_v36, %v586_v40  ;;  %v1355_v36 = vld [vmem:[%s2359_s5 + $0x118] sm:$0xf0]  ;;  %v1347_v39 = vld [vmem:[%s2359_s5 + $0x108] sm:$0xf0] }
 0x147   :  { %818 = vmatmul.bf16.vlgmr.msra.gmra.mxu2 %v2091_v42  ;;  %v1358_v37 = vor.u32 %v1633_v35, %v1355_v36  ;;  %v1350_v40 = vor.u32 %v1631_v38, %v1347_v39  ;;  %v1478_v35 = vor.u32 %v1623_v32, %v1475_v33  ;;  %v1624_v36 = vld [vmem:[%s2359_s5 + $0xc4] sm:$0xf0]  ;;  %v1670_v38 = vld [vmem:[%s2358_s4 + $0x110] sm:$0xff] }
 0x148   :  { %307 = vmatmul.bf16.vlgmr.msrb.gmra.mxu3 %v192_v41  ;;  %320 = vmatmul.bf16.vlgmr.msrb.gmra.mxu1 %v192_v41  ;;  %v585_v56 = vrot.slane %v192_v41, 7  ;;  %v1678_v39 = vld [vmem:[%s2358_s4 + $0x150] sm:$0xff] }
 0x149   :  { %v153_v45 = vpop.f32.mrf.mxu1  ;;  %836 = vmatpush.bf16.msrb.mxu3 %v1470_v57  ;;  %829 = vmatpush.bf16.msra.mxu0 %v1358_v37 }
 0x14a   :  { %v2133_v60 = vsel %vm587_vm2, %v192_v41, %v585_v56  ;;  %v1278_v41 = vld [vmem:[%s2360_s6 + $0x2] ss:$8 sm:$0x3]  ;;  %1060 = vmatpush.bf16.msrb.mxu1 %v1670_v38 }
 0x14b   :  { %v399_v43 = vperm.slane %v1278_v41, 1  ;;  %v398_v51 = vperm.slane %v1278_v41, 0  ;;  %v1677_v41 = vld [vmem:[%s2358_s4 + $0x148] sm:$0xff] }
 0x14d   :  { %837 = vmatpush.bf16.msrb.mxu3 %v1462_v61  ;;  %830 = vmatpush.bf16.msra.mxu0 %v1350_v40  ;;  %v1669_v40 = vld [vmem:[%s2358_s4 + $0x108] sm:$0xff] }
 0x14e   :  { %1061 = vmatpush.bf16.msrb.mxu1 %v1669_v40 }
 0x151   :  { %838 = vmatpush.bf16.msrb.mxu3 %v1454_v3  ;;  %v1630_v3 = vld [vmem:[%s2359_s5 + $0xf4] sm:$0xf0] }
 0x152   :  { %v1498_v4 = vor.u32 %v1630_v3, %v1497_v1 }
 0x155   :  { %839 = vmatpush.bf16.msrb.mxu3 %v1446_v9  ;;  %v1625_v9 = vld [vmem:[%s2359_s5 + $0xd4] sm:$0xf] }
 0x156   :  { %v1486_v14 = vor.u32 %v1625_v9, %v1483_v10 }
 0x158   :  { %805 = vmatmul.bf16.vlgmr.msra.gmra.mxu1 %v2133_v60 }
 0x159   :  { %840 = vmatpush.bf16.msrb.mxu3 %v1438_v15  ;;  %v569_v23 = vpop.permute.xlu0 %568 }
 0x15d   :  { %841 = vmatpush.bf16.msrb.mxu3 %v1430_v21 }
 0x161   :  { %842 = vmatpush.bf16.msrb.mxu3 %v1422_v28 }
 0x165   :  { %843 = vmatpush.bf16.msrb.mxu3 %v1414_v34  ;;  %v1473_v34 = vld [vmem:[%s2359_s5 + $0xc0] sm:$0xf] }
 0x166   :  { %v1474_v37 = vor.u32 %v1624_v36, %v1473_v34 }
 0x1c5   :  { %v321_v45 = vpop.f32.mrf.mxu1 }
 0x1c6   :  { %v392_v47 = vadd.f32 %v2100_v46, %v321_v45  ;;  %v1667_v45 = vld [vmem:[%s2358_s4 + $0xf8] sm:$0xff] }
 0x1c8   :  { %v403_v48 = vadd.f32 %v399_v43, %v392_v47  ;;  %v1668_v43 = vld [vmem:[%s2358_s4 + $0x100] sm:$0xff]  ;;  %v1675_v47 = vld [vmem:[%s2358_s4 + $0x138] sm:$0xff] }
 0x1c9   :  { %1062 = vmatpush.bf16.msrb.mxu1 %v1668_v43 }
 0x1ca   :  { %v405_v49 = vmax.f32 %v403_v48, 0.0  ;;  %v819_v50 = vpop.f32.mrf.mxu2  ;;  %v1666_v48 = vld [vmem:[%s2358_s4 + $0xf0] sm:$0xff] }
 0x1cb   :  { %v308_v52 = vpop.f32.mrf.mxu3 }
 0x1cc   :  { %v407_v53 = vpack.c.bf16 %v405_v49, %v405_v49  ;;  %v379_v54 = vadd.f32 %v2067_v26, %v308_v52  ;;  %v1629_v26 = vld [vmem:[%s2359_s5 + $0xf4] sm:$0xf]  ;;  %v1665_v49 = vld [vmem:[%s2358_s4 + $0xe8] sm:$0xff] }
 0x1cd   :  { %v323_v55 = vpop.f32.mrf.mxu1  ;;  %v1502_v2 = vor.u32 %v1629_v26, %v1499_v0  ;;  %1063 = vmatpush.bf16.msrb.mxu1 %v1667_v45 }
 0x1ce   :  { %v402_v56 = vadd.f32 %v398_v51, %v379_v54  ;;  %558 = vmatmul.bf16.vlgmr.msra.gmra.mxu3 %v407_v53 }
 0x1cf   :  { %909 = vmatpush.bf16.msrb.mxu2 %v1502_v2 }
 0x1d0   :  { %v404_v57 = vmax.f32 %v402_v56, 0.0  ;;  %v1674_v56 = vld [vmem:[%s2358_s4 + $0x130] sm:$0xff] }
 0x1d1   :  { %1064 = vmatpush.bf16.msrb.mxu1 %v1666_v48 }
 0x1d2   :  { %v406_v58 = vpack.c.bf16 %v404_v57, %v404_v57  ;;  %v821_v59 = vpop.f32.mrf.mxu2  ;;  %v1664_v57 = vld [vmem:[%s2358_s4 + $0xe0] sm:$0xff] }
 0x1d3   :  { %v310_v61 = vpop.f32.mrf.mxu3  ;;  %v1663_v59 = vld [vmem:[%s2358_s4 + $0xd8] sm:$0xff] }
 0x1d4   :  { %545 = vmatmul.bf16.vlgmr.msrb.gmra.mxu0 %v406_v58  ;;  %v1673_v58 = vld [vmem:[%s2358_s4 + $0x128] sm:$0xff]  ;;  %v1672_v61 = vld [vmem:[%s2358_s4 + $0x120] sm:$0xff] }
 0x1d5   :  { %v806_v62 = vpop.f32.mrf.mxu1  ;;  %896 = vmatpush.bf16.msrb.mxu0 %v1498_v4  ;;  %1065 = vmatpush.bf16.msrb.mxu1 %v1665_v49 }
 0x1d6   :  { %v2229_v63 = vadd.f32 %v819_v50, %v806_v62  ;;  %v577_v50 = vld [vmem:[%s2357_s3 + $0x2] sm:$0x3]  ;;  %v1671_v62 = vld [vmem:[%s2358_s4 + $0x118] sm:$0xff]  ;;  %s1714_s4 = smov [#allocation2]  }
 0x1d7   :  { %v579_v51 = vrot.slane %v577_v50, 6  ;;  %s1115_s14 = sshll.u32 %s1714_s4, 4  ;;  %s1116_s14 = int_to_ptr.vmem [resolvable:$true] %s1115_s14 }
 0x1d8   :  { %1120 = dma.vmem_to_hbm [thread:$0]  %s1116_s14, 32, %s1118_s17, [#allocation3]  }
 0x1d9   :  { %897 = vmatpush.bf16.msrb.mxu0 %v1490_v8  ;;  %1066 = vmatpush.bf16.msrb.mxu1 %v1664_v57 }
 0x1dd   :  { %v808_v46 = vpop.f32.mrf.mxu1  ;;  %898 = vmatpush.bf16.msrb.mxu0 %v1482_v17  ;;  %1067 = vmatpush.bf16.msrb.mxu1 %v1663_v59 }
 0x1de   :  { %844 = vmatmul.bf16.vlgmr.msrb.gmra.mxu3 %v2091_v42  ;;  %v1627_v42 = vld [vmem:[%s2359_s5 + $0xe4] sm:$0xf] }
 0x1df   :  { %v1505_v46 = vld [vmem:[%s2360_s6 + $0x4] ss:$8 sm:$0x3] }
 0x1e0   :  { %v921_v26 = vperm.slane %v1505_v46, 0 }
 0x1e1   :  { %899 = vmatpush.bf16.msrb.mxu0 %v1474_v37 }
 0x1e4   :  { %831 = vmatmul.bf16.vlgmr.msra.gmra.mxu0 %v2133_v60  ;;  %v1491_v60 = vld [vmem:[%s2359_s5 + $0xe8] sm:$0xf0] }
 0x1e5   :  { %v1494_v7 = vor.u32 %v1627_v42, %v1491_v60  ;;  %v922_v42 = vperm.slane %v1505_v46, 1 }
 0x1e7   :  { %910 = vmatpush.bf16.msrb.mxu2 %v1494_v7 }
 0x1eb   :  { %911 = vmatpush.bf16.msrb.mxu2 %v1486_v14 }
 0x1ef   :  { %912 = vmatpush.bf16.msrb.mxu2 %v1478_v35 }
 0x1f3   :  { %1073 = vmatpush.bf16.msra.mxu2 %v1678_v39 }
 0x1f7   :  { %1074 = vmatpush.bf16.msra.mxu2 %v1677_v41 }
 0x1fb   :  { %1075 = vmatpush.bf16.msra.mxu2 %v1676_v44 }
 0x1ff   :  { %1076 = vmatpush.bf16.msra.mxu2 %v1675_v47 }
 0x203   :  { %1077 = vmatpush.bf16.msra.mxu2 %v1674_v56 }
 0x207   :  { %1078 = vmatpush.bf16.msra.mxu2 %v1673_v58 }
 0x20b   :  { %1079 = vmatpush.bf16.msra.mxu2 %v1672_v61 }
 0x20f   :  { %1080 = vmatpush.bf16.msra.mxu2 %v1671_v62 }
 0x251   :  { %v546_v15 = vpop.f32.mrf.mxu0  ;;  %v559_v16 = vpop.f32.mrf.mxu3 }
 0x252   :  { %v547_v18 = vadd.f32 %v546_v15, %v440_v13 }
 0x254   :  { %v560_v19 = vadd.f32 %v559_v16, %v547_v18 }
 0x256   :  { %563 = vst [vmem:[%s2362_s8] sm:$0x3] %v560_v19  ;;  %v565_v20 = vmul.f32 1.442695, %v560_v19 }
 0x258   :  { %1681 = vpow2.f32 %v565_v20 }
 0x259   :  { %v548_v21 = vpop.f32.mrf.mxu0  ;;  %v561_v22 = vpop.f32.mrf.mxu3 }
 0x25e   :  { %v1682_v24 = vpop.eup %1681 }
 0x25f   :  { %v571_v25 = vmul.f32 %v1682_v24, %v569_v23 }
 0x261   :  { %v832_v27 = vpop.f32.mrf.mxu0  ;;  %v845_v28 = vpop.f32.mrf.mxu3  ;;  %573 = vrot.lane.b32.xlu0 %v571_v25, %s1713_s18 }
 0x262   :  { %v846_v29 = vadd.f32 %v845_v28, %v832_v27 }
 0x269   :  { %v834_v30 = vpop.f32.mrf.mxu0  ;;  %v847_v31 = vpop.f32.mrf.mxu3 }
 0x2d3   :  { %v574_v52 = vpop.permute.xlu0 %573 }
 0x2d4   :  { %v576_v53 = vadd.f32 %v574_v52, %v560_v19 }
 0x2d6   :  { %v582_v54 = vsel %vm581_vm3, %v576_v53, %v579_v51 }
 0x2d7   :  { %v596_v55 = vpack.c.bf16 %v582_v54, %v582_v54 }
 0x2d9   :  { %1503 = vmatmul.msk.bf16.vlgmr.msrb.gmra.mxu0 %vm365_vm1, %v596_v55  ;;  %1504 = vmatmul.msk.bf16.vlgmr.msrb.gmra.mxu2 %vm365_vm1, %v596_v55 }
 0x356   :  { %v901_v0 = vpop.f32.mrf.mxu0 }
 0x357   :  { %v902_v1 = vadd.f32 %v901_v0, %v2229_v63 }
 0x359   :  { %v925_v2 = vadd.f32 %v921_v26, %v902_v1 }
 0x35b   :  { %v927_v3 = vmax.f32 %v925_v2, 0.0 }
 0x35c   :  { %v914_v60 = vpop.f32.mrf.mxu2 }
 0x35d   :  { %v929_v4 = vpack.c.bf16 %v927_v3, %v927_v3  ;;  %v915_v5 = vadd.f32 %v914_v60, %v846_v29 }
 0x35e   :  { %v903_v6 = vpop.f32.mrf.mxu0 }
 0x35f   :  { %v926_v7 = vadd.f32 %v922_v42, %v915_v5  ;;  %1068 = vmatmul.bf16.vlgmr.msrb.gmra.mxu1 %v929_v4 }
 0x361   :  { %v928_v8 = vmax.f32 %v926_v7, 0.0 }
 0x363   :  { %v930_v9 = vpack.c.bf16 %v928_v8, %v928_v8 }
 0x364   :  { %v916_v10 = vpop.f32.mrf.mxu2 }
 0x365   :  { %1081 = vmatmul.bf16.vlgmr.msra.gmra.mxu2 %v930_v9 }
 0x3dc   :  { %v1069_v63 = vpop.f32.mrf.mxu1 }
 0x3dd   :  { %v1070_v13 = vadd.f32 %v1069_v63, %v963_v11 }
 0x3e4   :  { %v1071_v12 = vpop.f32.mrf.mxu1 }
 0x3e8   :  { %v1082_v14 = vpop.f32.mrf.mxu2 }
 0x3e9   :  { %v1083_v15 = vadd.f32 %v1082_v14, %v1070_v13 }
 0x3eb   :  { %v1570_v16 = vmul.f32 -1.442695, %v1083_v15 }
 0x3ed   :  { %1683 = vpow2.f32 %v1570_v16 }
 0x3f0   :  { %v1084_v17 = vpop.f32.mrf.mxu2 }
 0x3f3   :  { %v1684_v18 = vpop.eup %1683 }
 0x3f4   :  { %v1089_v19 = vadd.f32 1.0, %v1684_v18 }
 0x3f6   :  { %1685 = vrcp.f32 %v1089_v19  ;;  %v1101_v23 = vand.u32 2147483648, %v1089_v19  ;;  %v1099_v25 = vand.u32 2147483647, %v1089_v19  ;;  %vm1095_vm5 = vweird.f32 %v1089_v19 }
 0x3f8   :  { %v1102_v28 = vor.u32 1.1754944e-38, %v1101_v23  ;;  %vm1100_vm7 = vcmp.eq.f32.partialorder %v1099_v25, 8.507059e+37 }
 0x3fc   :  { %v1686_v20 = vpop.eup %1685 }
 0x3fd   :  { %v1091_v21 = vmul.f32 %v1686_v20, %v1089_v19  ;;  %vm1096_vm4 = vweird.f32 %v1686_v20 }
 0x3fe   :  { %vm1097_vm6 = vmor %vm1095_vm5, %vm1096_vm4 }
 0x3ff   :  { %v1092_v22 = vsub.f32 1.0, %v1091_v21 }
 0x401   :  { %v1093_v24 = vmul.f32 %v1686_v20, %v1092_v22 }
 0x403   :  { %v1094_v27 = vadd.f32 %v1686_v20, %v1093_v24 }
 0x405   :  { %v1098_v29 = vsel %vm1097_vm6, %v1686_v20, %v1094_v27 }
 0x406   :  { %v1103_v30 = vsel %vm1100_vm7, %v1102_v28, %v1098_v29 }
 0x407   :  { %1105 = vst [vmem:[%s2361_s7] sm:$0xf] %v1103_v30 }
 0x408   :  { %1711 = dma.done.wait [#allocation3], 32  }
 0x409   :  { %1712 = vsyncadd [#allocation3], 4294967264 }
 0x40a   :  { %1129 = vsyncpa [#allocation3], 1 }

</bundles_post_ra>
